<compile_context>
chip_gen: v6e
topology: v6e:2x2x1
jax: 0.10.0
libtpu: 0.0.40
codegen_flags: <defaults>
</compile_context>

<pallas_src>
import functools

import jax
import jax.numpy as jnp
from jax.experimental import pallas as pl
from jax.experimental.pallas import tpu as pltpu

HIDDEN = 64            # per-branch hidden width (from the module)
FUSED_H = 2 * HIDDEN   # 128: [actor hidden | critic hidden] -> one vreg lane width
LANE = 128
SUBLANE = 8
VMEM_BUDGET = 40 << 20       # sized for v7x's 64 MiB physical VMEM (ok on v5e/v6e)
VMEM_LIMIT_BYTES = 48 << 20  # explicit scoped-VMEM limit handed to Mosaic


def _round_up(x, m):
    return (x + m - 1) // m * m


def _round_down(x, m):
    return max(m, x // m * m)


def _actor_critic_kernel(x_ref, w1_ref, w2_ref, wh_ref, b_ref, out_ref, *, tanh_dtype):
    """Fused actor+critic MLP: 3 MXU matmuls per batch tile, f32 accumulation.

    b_ref packs the six biases into one sublane-aligned [8, 128] f32 tensor:
      row 0 -> layer-1 bias (128 lanes), row 1 -> layer-2 bias (128 lanes),
      row 2 -> head bias (first out_w lanes). Remaining rows are zero.
    """
    cdt = w1_ref.dtype               # matmul input dtype (f32 or bf16)
    out_w = wh_ref.shape[1]
    x = x_ref[...].astype(cdt)

    h = jnp.dot(x, w1_ref[...], preferred_element_type=jnp.float32) + b_ref[0:1, :]
    h = jnp.tanh(h.astype(tanh_dtype))     # bf16 tanh (v6e/v7x) halves EUP time
    h = jnp.dot(h.astype(cdt), w2_ref[...], preferred_element_type=jnp.float32) + b_ref[1:2, :]
    h = jnp.tanh(h.astype(tanh_dtype))
    out_ref[...] = (
        jnp.dot(h.astype(cdt), wh_ref[...], preferred_element_type=jnp.float32)
        + b_ref[2:3, :out_w]
    ).astype(out_ref.dtype)


def fuse_params(params, n_act, compute_dtype=jnp.float32):
    """Fuse the 12 per-layer tensors into 4 resident tensors.

    Returns (w1 [obs_dim,128], w2 [128,128], wh [128,out_w], biases [8,128]).
    out_w = round_up(n_act + 1, 8): logit lanes + value lane, kept narrow so the
    output slab (the dominant HBM traffic) stays small. Padded lanes are exact
    zeros because wh / biases are zero there.
    """
    (wa1, ba1, wa2, ba2, wap, bap, wc1, bc1, wc2, bc2, wcv, bcv) = params
    out_w = _round_up(n_act + 1, SUBLANE)

    # layer 1: [obs_dim, 128] = [Wa1 | Wc1]
    w1 = jnp.concatenate([wa1, wc1], axis=1)

    # layer 2: [128, 128] block-diag so actor/critic hiddens stay independent
    w2 = jnp.zeros((FUSED_H, FUSED_H), jnp.float32)
    w2 = w2.at[:HIDDEN, :HIDDEN].set(wa2).at[HIDDEN:, HIDDEN:].set(wc2)

    # heads: [128, out_w]; actor hidden rows -> logit lanes, critic rows -> value lane
    wh = jnp.zeros((FUSED_H, out_w), jnp.float32)
    wh = wh.at[:HIDDEN, :n_act].set(wap).at[HIDDEN:, n_act:n_act + 1].set(wcv)

    # All six biases merged into one sublane-aligned [8, 128] f32 tensor.
    biases = jnp.zeros((SUBLANE, LANE), jnp.float32)
    biases = biases.at[0:1, :].set(jnp.concatenate([ba1, bc1], axis=1))
    biases = biases.at[1:2, :].set(jnp.concatenate([ba2, bc2], axis=1))
    biases = biases.at[2:3, :n_act].set(bap).at[2:3, n_act:n_act + 1].set(bcv)

    # Weights in the matmul compute dtype (bf16 halves resident bytes on v6e/v7x);
    # biases, tanh inputs and accumulation stay f32 unless tanh_dtype overrides.
    return (w1.astype(compute_dtype), w2.astype(compute_dtype),
            wh.astype(compute_dtype), biases)


def _auto_tile_b(obs_dim, out_w, weight_bytes):
    """Largest batch tile whose double-buffered I/O + f32 temporaries fit the budget."""
    per_row = 2 * (obs_dim * 4 + out_w * 4) + 4 * FUSED_H * 4   # in/out bufs + temps
    avail = max(0, VMEM_BUDGET - 2 * weight_bytes)               # resident weights x2
    return max(SUBLANE, min(8192, _round_down(avail // per_row, SUBLANE)))


@functools.partial(jax.jit, static_argnames=("n_act", "tile_b", "tanh_dtype"))
def actor_critic_forward(state, fused_params, *, n_act, tile_b=None,
                         tanh_dtype=jnp.float32):
    """state: [B, *obs_shape]. Returns (policy logits [B, n_act], value [B])."""
    B = state.shape[0]
    x = state.reshape(B, -1)                     # nn.Flatten(); no extra HBM pass
    if x.dtype != jnp.float32:
        x = x.astype(jnp.float32)
    obs_dim = x.shape[1]

    w1, w2, wh, biases = fused_params
    out_w = wh.shape[1]
    weight_bytes = sum(int(t.size) * t.dtype.itemsize for t in fused_params)

    # Batch tile: as large as VMEM allows (amortize ~0.35us per grid step), but
    # capped at ceil(B/2) rounded to 8 so large batches always get >= 2 grid
    # steps and the "parallel" axis uses both TensorCores on v7x. No wrapper
    # padding: the last block may be partial (OOB rows are independent garbage,
    # never reduced over; OOB writes are masked).
    tb_cap = _auto_tile_b(obs_dim, out_w, weight_bytes) if tile_b is None else int(tile_b)
    half_b = _round_up(-(-B // 2), SUBLANE)
    tb = max(SUBLANE, min(_round_down(tb_cap, SUBLANE), half_b))
    grid = (pl.cdiv(B, tb),)

    resident = lambda i: (0, 0)   # weights/biases: same block every grid step

    out = pl.pallas_call(
        functools.partial(_actor_critic_kernel, tanh_dtype=tanh_dtype),
        out_shape=jax.ShapeDtypeStruct((B, out_w), jnp.float32),
        grid_spec=pltpu.PrefetchScalarGridSpec(
            num_scalar_prefetch=0,
            grid=grid,
            in_specs=[
                pl.BlockSpec((tb, obs_dim), lambda i: (i, 0)),  # batch-tiled input
                pl.BlockSpec(w1.shape, resident),
                pl.BlockSpec(w2.shape, resident),
                pl.BlockSpec(wh.shape, resident),
                pl.BlockSpec(biases.shape, resident),
            ],
            out_specs=pl.BlockSpec((tb, out_w), lambda i: (i, 0)),  # narrow output slab
        ),
        compiler_params=pltpu.CompilerParams(
            dimension_semantics=("parallel",),   # batch tiles split across TCs (v7x)
            vmem_limit_bytes=VMEM_LIMIT_BYTES,
        ),
    )(x, w1, w2, wh, biases)

    logits = out[:, :n_act]
    value = out[:, n_act]          # CriticHead's nn.Flatten(0): [B, 1] -> [B]
    return logits, value


def init_params(key, obs_dim, n_act, hidden=HIDDEN):
    """Deterministic synthetic init. Weights stored as [in, out]; biases as [1, out]."""
    ks = jax.random.split(key, 6)

    def lin(k, din, dout, std):
        w = jax.random.normal(k, (din, dout), jnp.float32) * std / jnp.sqrt(din)
        b = jnp.zeros((1, dout), jnp.float32)
        return w, b

    wa1, ba1 = lin(ks[0], obs_dim, hidden, 1.4)
    wa2, ba2 = lin(ks[1], hidden, hidden, 1.4)
    wap, bap = lin(ks[2], hidden, n_act, 0.01)
    wc1, bc1 = lin(ks[3], obs_dim, hidden, 1.4)
    wc2, bc2 = lin(ks[4], hidden, hidden, 1.4)
    wcv, bcv = lin(ks[5], hidden, 1, 1.0)
    return (wa1, ba1, wa2, ba2, wap, bap, wc1, bc1, wc2, bc2, wcv, bcv)


def reference_forward(state, params):
    """Pure-JAX f32 reference of the unfused module forward (sanity check)."""
    (wa1, ba1, wa2, ba2, wap, bap, wc1, bc1, wc2, bc2, wcv, bcv) = params
    x = state.reshape(state.shape[0], -1)
    h = jnp.tanh(x @ wa1 + ba1)
    h = jnp.tanh(h @ wa2 + ba2)
    logits = h @ wap + bap
    g = jnp.tanh(x @ wc1 + bc1)
    g = jnp.tanh(g @ wc2 + bc2)
    value = (g @ wcv + bcv).reshape(-1)
    return logits, value


if __name__ == "__main__":
    key = jax.random.PRNGKey(0)
    k_obs, k_obs2, k_par = jax.random.split(key, 3)

    B, obs_dim, n_act = 6, 16, 6  # small Box obs space (16,), Discrete(6) actions
    state = jax.random.normal(k_obs, (B, obs_dim), jnp.float32)
    params = init_params(k_par, obs_dim, n_act)
    ref_logits, ref_value = reference_forward(state, params)

    # --- f32 path (matches module numerics), auto tile, single grid step ---
    fused_f32 = fuse_params(params, n_act, jnp.float32)
    logits, value = actor_critic_forward(state, fused_f32, n_act=n_act)
    jax.block_until_ready((logits, value))
    assert logits.shape == (B, n_act) and value.shape == (B,)
    assert jnp.allclose(logits, ref_logits, atol=1e-5, rtol=1e-5)
    assert jnp.allclose(value, ref_value, atol=1e-5, rtol=1e-5)

    # --- multi-tile grid with a partial last block (B=20, tile_b=8 -> 3 steps) ---
    B2 = 20
    state2 = jax.random.normal(k_obs2, (B2, obs_dim), jnp.float32)
    ref_logits2, ref_value2 = reference_forward(state2, params)
    logits2, value2 = actor_critic_forward(state2, fused_f32, n_act=n_act, tile_b=8)
    jax.block_until_ready((logits2, value2))
    assert logits2.shape == (B2, n_act) and value2.shape == (B2,)
    assert jnp.allclose(logits2, ref_logits2, atol=1e-5, rtol=1e-5)
    assert jnp.allclose(value2, ref_value2, atol=1e-5, rtol=1e-5)

    # --- auto tile on B=20 -> tb=16, 2 grid steps (both TensorCores on v7x) ---
    logits3, value3 = actor_critic_forward(state2, fused_f32, n_act=n_act)
    jax.block_until_ready((logits3, value3))
    assert jnp.allclose(logits3, ref_logits2, atol=1e-5, rtol=1e-5)
    assert jnp.allclose(value3, ref_value2, atol=1e-5, rtol=1e-5)

    # --- bf16 matmul weights (f32 accumulation); bf16 tanh only on v6e/v7x ---
    kind = jax.devices()[0].device_kind.lower()
    old_gen = any(v in kind for v in ("v2", "v3", "v4", "v5"))
    tanh_dt = jnp.float32 if old_gen else jnp.bfloat16
    fused_bf16 = fuse_params(params, n_act, jnp.bfloat16)
    logits_bf, value_bf = actor_critic_forward(
        state, fused_bf16, n_act=n_act, tanh_dtype=tanh_dt)
    jax.block_until_ready((logits_bf, value_bf))
    assert jnp.allclose(logits_bf, ref_logits, atol=1e-1, rtol=1e-1)
    assert jnp.allclose(value_bf, ref_value, atol=1e-1, rtol=1e-1)

    print("KERNEL_OK")
</pallas_src>

<mosaic_0001>
module attributes {stable_mosaic.version = 11 : i64} {
  func.func @_actor_critic_kernel(%arg0: i32, %arg1: memref<8x16xf32, #tpu.memory_space<vmem>>, %arg2: memref<16x128xf32, #tpu.memory_space<vmem>>, %arg3: memref<128x128xf32, #tpu.memory_space<vmem>>, %arg4: memref<128x8xf32, #tpu.memory_space<vmem>>, %arg5: memref<8x128xf32, #tpu.memory_space<vmem>>, %arg6: memref<8x8xf32, #tpu.memory_space<vmem>>) attributes {dimension_semantics = [#tpu.dimension_semantics<parallel>], iteration_bounds = array<i64: 1>, scalar_prefetch = 0 : i64, scratch_operands = 0 : i64, tpu.core_type = #tpu.core_type<tc>, window_params = [{transform_indices = @transform_0, window_bounds = array<i64: 8, 16>}, {pipeline_mode = #tpu.pipeline_mode<synchronous>, transform_indices = @transform_1, window_bounds = array<i64: 16, 128>}, {pipeline_mode = #tpu.pipeline_mode<synchronous>, transform_indices = @transform_2, window_bounds = array<i64: 128, 128>}, {pipeline_mode = #tpu.pipeline_mode<synchronous>, transform_indices = @transform_3, window_bounds = array<i64: 128, 8>}, {pipeline_mode = #tpu.pipeline_mode<synchronous>, transform_indices = @transform_4, window_bounds = array<i64: 8, 128>}, {transform_indices = @transform_5, window_bounds = array<i64: 8, 8>}]} {
    %c0 = arith.constant 0 : index
    %c0_0 = arith.constant 0 : index
    %0 = vector.load %arg1[%c0, %c0_0] : memref<8x16xf32, #tpu.memory_space<vmem>>, vector<8x16xf32>
    %c0_1 = arith.constant 0 : index
    %c0_2 = arith.constant 0 : index
    %1 = vector.load %arg2[%c0_1, %c0_2] : memref<16x128xf32, #tpu.memory_space<vmem>>, vector<16x128xf32>
    %cst = arith.constant dense<0.000000e+00> : vector<8x128xf32>
    %2 = tpu.matmul %0, %1, %cst {dimension_numbers = #tpu.dot_dimension_numbers<[1], [0], [0], [1], [0, 0, 1, 1], [], []>} : vector<8x16xf32>, vector<16x128xf32>, vector<8x128xf32> -> vector<8x128xf32>
    %c0_3 = arith.constant 0 : index
    %c0_4 = arith.constant 0 : index
    %3 = vector.load %arg5[%c0_3, %c0_4] : memref<8x128xf32, #tpu.memory_space<vmem>>, vector<1x128xf32>
    %4 = vector.broadcast %3 : vector<1x128xf32> to vector<8x128xf32>
    %5 = arith.addf %2, %4 : vector<8x128xf32>
    %6 = math.tanh %5 : vector<8x128xf32>
    %c0_5 = arith.constant 0 : index
    %c0_6 = arith.constant 0 : index
    %7 = vector.load %arg3[%c0_5, %c0_6] : memref<128x128xf32, #tpu.memory_space<vmem>>, vector<128x128xf32>
    %cst_7 = arith.constant dense<0.000000e+00> : vector<8x128xf32>
    %8 = tpu.matmul %6, %7, %cst_7 {dimension_numbers = #tpu.dot_dimension_numbers<[1], [0], [0], [1], [0, 0, 1, 1], [], []>} : vector<8x128xf32>, vector<128x128xf32>, vector<8x128xf32> -> vector<8x128xf32>
    %c1 = arith.constant 1 : index
    %c0_8 = arith.constant 0 : index
    %9 = vector.load %arg5[%c1, %c0_8] : memref<8x128xf32, #tpu.memory_space<vmem>>, vector<1x128xf32>
    %10 = vector.broadcast %9 : vector<1x128xf32> to vector<8x128xf32>
    %11 = arith.addf %8, %10 : vector<8x128xf32>
    %12 = math.tanh %11 : vector<8x128xf32>
    %c0_9 = arith.constant 0 : index
    %c0_10 = arith.constant 0 : index
    %13 = vector.load %arg4[%c0_9, %c0_10] : memref<128x8xf32, #tpu.memory_space<vmem>>, vector<128x8xf32>
    %cst_11 = arith.constant dense<0.000000e+00> : vector<8x8xf32>
    %14 = tpu.matmul %12, %13, %cst_11 {dimension_numbers = #tpu.dot_dimension_numbers<[1], [0], [0], [1], [0, 0, 1, 1], [], []>} : vector<8x128xf32>, vector<128x8xf32>, vector<8x8xf32> -> vector<8x8xf32>
    %c2 = arith.constant 2 : index
    %c0_12 = arith.constant 0 : index
    %15 = vector.load %arg5[%c2, %c0_12] : memref<8x128xf32, #tpu.memory_space<vmem>>, vector<1x8xf32>
    %16 = vector.broadcast %15 : vector<1x8xf32> to vector<8x8xf32>
    %17 = arith.addf %14, %16 : vector<8x8xf32>
    %c0_13 = arith.constant 0 : index
    %c0_14 = arith.constant 0 : index
    %18 = vector.load %arg6[%c0_13, %c0_14] : memref<8x8xf32, #tpu.memory_space<vmem>>, vector<8x8xf32>
    tpu.vector_store %arg6[%c0_13, %c0_14], %17 {strides = array<i32>} : memref<8x8xf32, #tpu.memory_space<vmem>>, vector<8x8xf32>,
    return
  }
  func.func @transform_0(%arg0: i32) -> (i32, i32) {
    %c0_i32 = arith.constant 0 : i32
    %c0_i32_0 = arith.constant 0 : i32
    return %arg0, %c0_i32 : i32, i32
  }
  func.func @transform_1(%arg0: i32) -> (i32, i32) {
    %c0_i32 = arith.constant 0 : i32
    %c0_i32_0 = arith.constant 0 : i32
    %c0_i32_1 = arith.constant 0 : i32
    return %c0_i32, %c0_i32_0 : i32, i32
  }
  func.func @transform_2(%arg0: i32) -> (i32, i32) {
    %c0_i32 = arith.constant 0 : i32
    %c0_i32_0 = arith.constant 0 : i32
    %c0_i32_1 = arith.constant 0 : i32
    return %c0_i32, %c0_i32_0 : i32, i32
  }
  func.func @transform_3(%arg0: i32) -> (i32, i32) {
    %c0_i32 = arith.constant 0 : i32
    %c0_i32_0 = arith.constant 0 : i32
    %c0_i32_1 = arith.constant 0 : i32
    return %c0_i32, %c0_i32_0 : i32, i32
  }
  func.func @transform_4(%arg0: i32) -> (i32, i32) {
    %c0_i32 = arith.constant 0 : i32
    %c0_i32_0 = arith.constant 0 : i32
    %c0_i32_1 = arith.constant 0 : i32
    return %c0_i32, %c0_i32_0 : i32, i32
  }
  func.func @transform_5(%arg0: i32) -> (i32, i32) {
    %c0_i32 = arith.constant 0 : i32
    %c0_i32_0 = arith.constant 0 : i32
    return %arg0, %c0_i32 : i32, i32
  }
}

</mosaic_0001>

<bundles_post_ra>
// kernel: actor_critic_forward.1
= control target key start
LH: loop header
LB: loop body
LE: loop exit
PB: predicated region body
PF: predicated region fallthrough
CT: control target
= control target key end

     0   :  { %10 = vsyncpa [#allocation3], 0  ;;  %s676_s0 = inlined_call_operand.vmem [shape: f32[6,16], index: 0, kind: input, shape index: {}]   ;;  %s677_s1 = inlined_call_operand.hbm [shape: f32[16,128], index: 1, kind: input, shape index: {}]   ;;  %s678_s2 = inlined_call_operand.vmem [shape: f32[128,128], index: 2, kind: input, shape index: {}]   ;;  %s679_s3 = inlined_call_operand.vmem [shape: f32[128,8], index: 3, kind: input, shape index: {}]   ;;  %s680_s4 = inlined_call_operand.hbm [shape: f32[8,128], index: 4, kind: input, shape index: {}]   ;;  %s681_s5 = inlined_call_operand.vmem [shape: f32[6,8], index: 5, kind: output, shape index: {}]  }
   0x1   :  { %11 = vsyncpa [#allocation5], 0  ;;  %s492_s18 = smov [#allocation2]  }
   0x2   :  { %s19_s19 = sshll.u32 %s492_s18, 4  ;;  %s20_s19 = int_to_ptr.vmem [resolvable:$true] %s19_s19 }
   0x3   :  { %s456_s20 = scalar_lea.vmem %s20_s19, 256  ;;  %p461_p1 = scmp.lt.s32.totalorder %s20_s19, %s20_s19 }
   0x4   :  { %p457_p0 = scmp.ne.s32.totalorder %s20_s19, %s456_s20  ;;  %p462_p2 = scmp.lt.s32.totalorder %s456_s20, %s456_s20 }
   0x6   :  { %p463_p3 = por %p462_p2, %p461_p1 }
   0x8   :  { %p464_p4 = pnand %p463_p3, %p457_p0 }
   0xa   :  { %467 = shalt.err (!%p464_p4)
}
   0xb   :  { %s493_s21 = smov 128   ;;  %s494_s22 = smov 8  }
   0xc   :  { %25 = dma.hbm_to_vmem [thread:$0]  %s677_s1, 256, %s20_s19, [#allocation3], %s493_s21, %s493_s21, %s494_s22  }
   0xd   :  { %s495_s25 = smov [#allocation4]  }
   0xe   :  { %s36_s26 = sshll.u32 %s495_s25, 4  ;;  %s37_s26 = int_to_ptr.vmem [resolvable:$true] %s36_s26 }
   0xf   :  { %s476_s27 = scalar_lea.vmem %s37_s26, 128  ;;  %p481_p6 = scmp.lt.s32.totalorder %s37_s26, %s37_s26 }
  0x10   :  { %p477_p5 = scmp.ne.s32.totalorder %s37_s26, %s476_s27  ;;  %p482_p7 = scmp.lt.s32.totalorder %s476_s27, %s476_s27 }
  0x12   :  { %p483_p8 = por %p482_p7, %p481_p6 }
  0x14   :  { %p484_p9 = pnand %p483_p8, %p477_p5 }
  0x16   :  { %487 = shalt.err (!%p484_p9)
}
  0x17   :  { %39 = dma.hbm_to_vmem [thread:$0]  %s680_s4, 128, %s37_s26, [#allocation5]  }
  0x18   :  { %488 = dma.done.wait [#allocation3], 256  }
  0x19   :  { %489 = vsyncadd [#allocation3], 4294967040 }
  0x1a   :  { %490 = dma.done.wait [#allocation5], 128  }
  0x1b   :  { %491 = vsyncadd [#allocation5], 4294967168  ;;  %v496_v0 = vmov 0.0   ;;  %vm497_vm0 = vmmov 0   ;;  %v48_v1 = vld [vmem:[#allocation2 + $0x8] sm:$0xff]  ;;  %v47_v2 = vld [vmem:[#allocation2] sm:$0xff] }
  0x1c   :  { %361 = vmatprep.subr.mxu0 %v496_v0  ;;  %365 = vmatprep.mubr.msk.f32.mxu0 %vm497_vm0, %v496_v0  ;;  %v46_v3 = vld [vmem:[%s676_s0] sm:$0xff]  ;;  %vm54_vm1 = vcmask 130048   ;;  %v144_v4 = vld [vmem:[%s678_s2 + $0x78] sm:$0xff]  ;;  %v143_v5 = vld [vmem:[%s678_s2 + $0x70] sm:$0xff]  ;;  %vm312_vm2 = vcmask 64512  }
  0x1d   :  { %368 = vmatprep.subr.mxu1 %v496_v0  ;;  %400 = vmatprep.mubr.msk.f32.mxu1 %vm497_vm0, %v496_v0  ;;  %v142_v6 = vld [vmem:[%s678_s2 + $0x68] sm:$0xff]  ;;  %v141_v7 = vld [vmem:[%s678_s2 + $0x60] sm:$0xff]  ;;  %v140_v8 = vld [vmem:[%s678_s2 + $0x58] sm:$0xff] }
  0x1e   :  { %362 = vmatpush3.msra.mxu0 %v48_v1  ;;  %369 = vmatpush3.msra.mxu1 %v144_v4  ;;  %v139_v9 = vld [vmem:[%s678_s2 + $0x50] sm:$0xff]  ;;  %v138_v10 = vld [vmem:[%s678_s2 + $0x48] sm:$0xff]  ;;  %v137_v11 = vld [vmem:[%s678_s2 + $0x40] sm:$0xff] }
  0x1f   :  { %363 = vmatprep.subr.mxu0 %v496_v0  ;;  %370 = vmatprep.subr.mxu1 %v496_v0  ;;  %v136_v12 = vld [vmem:[%s678_s2 + $0x38] sm:$0xff]  ;;  %v135_v13 = vld [vmem:[%s678_s2 + $0x30] sm:$0xff]  ;;  %v134_v14 = vld [vmem:[%s678_s2 + $0x28] sm:$0xff] }
  0x20   :  { %364 = vmatpush3.msra.mxu0 %v47_v2  ;;  %371 = vmatpush3.msra.mxu1 %v143_v5  ;;  %v133_v15 = vld [vmem:[%s678_s2 + $0x20] sm:$0xff]  ;;  %v132_v16 = vld [vmem:[%s678_s2 + $0x18] sm:$0xff]  ;;  %v131_v17 = vld [vmem:[%s678_s2 + $0x10] sm:$0xff] }
  0x21   :  { %366 = vmatmul.mubr.msk.f32.vlgmr.msra.gmra.mxu0 %vm54_vm1, %v46_v3  ;;  %372 = vmatprep.subr.mxu1 %v496_v0  ;;  %v130_v18 = vld [vmem:[%s678_s2 + $0x8] sm:$0xff]  ;;  %v129_v19 = vld [vmem:[%s678_s2] sm:$0xff]  ;;  %v236_v20 = vld [vmem:[%s679_s3 + $0x78] sm:$0xff] }
  0x22   :  { %403 = vmatprep.subr.mxu0 %v496_v0  ;;  %373 = vmatpush3.msra.mxu1 %v142_v6  ;;  %v235_v21 = vld [vmem:[%s679_s3 + $0x70] sm:$0xff]  ;;  %v234_v22 = vld [vmem:[%s679_s3 + $0x68] sm:$0xff]  ;;  %v233_v23 = vld [vmem:[%s679_s3 + $0x60] sm:$0xff] }
  0x23   :  { %435 = vmatprep.mubr.msk.f32.mxu0 %vm497_vm0, %v496_v0  ;;  %374 = vmatprep.subr.mxu1 %v496_v0  ;;  %v232_v24 = vld [vmem:[%s679_s3 + $0x58] sm:$0xff]  ;;  %v231_v25 = vld [vmem:[%s679_s3 + $0x50] sm:$0xff]  ;;  %v230_v26 = vld [vmem:[%s679_s3 + $0x48] sm:$0xff] }
  0x24   :  { %375 = vmatpush3.msra.mxu1 %v141_v7  ;;  %404 = vmatpush3.msra.mxu0 %v236_v20  ;;  %v320_v27 = vld [vmem:[#allocation4] ss:$0 sm:$0xff]  ;;  %v229_v32 = vld [vmem:[%s679_s3 + $0x40] sm:$0xff]  ;;  %v228_v33 = vld [vmem:[%s679_s3 + $0x38] sm:$0xff] }
  0x25   :  { %376 = vmatprep.subr.mxu1 %v496_v0  ;;  %405 = vmatprep.subr.mxu0 %v496_v0  ;;  %v227_v34 = vld [vmem:[%s679_s3 + $0x30] sm:$0xff]  ;;  %v226_v35 = vld [vmem:[%s679_s3 + $0x28] sm:$0xff]  ;;  %v225_v36 = vld [vmem:[%s679_s3 + $0x20] sm:$0xff] }
  0x26   :  { %377 = vmatpush3.msra.mxu1 %v140_v8  ;;  %406 = vmatpush3.msra.mxu0 %v235_v21  ;;  %v224_v37 = vld [vmem:[%s679_s3 + $0x18] sm:$0xff]  ;;  %v223_v38 = vld [vmem:[%s679_s3 + $0x10] sm:$0xff]  ;;  %v222_v39 = vld [vmem:[%s679_s3 + $0x8] sm:$0xff] }
  0x27   :  { %378 = vmatprep.subr.mxu1 %v496_v0  ;;  %407 = vmatprep.subr.mxu0 %v496_v0  ;;  %v221_v40 = vld [vmem:[%s679_s3] sm:$0xff]  ;;  %v322_v41 = vld [vmem:[#allocation4 + $0x1] ss:$0 sm:$0xff]  ;;  %v323_v46 = vld [vmem:[#allocation4 + $0x2] ss:$0 sm:$0xff] }
  0x28   :  { %379 = vmatpush3.msra.mxu1 %v139_v9  ;;  %408 = vmatpush3.msra.mxu0 %v234_v22 }
  0x29   :  { %380 = vmatprep.subr.mxu1 %v496_v0  ;;  %409 = vmatprep.subr.mxu0 %v496_v0 }
  0x2a   :  { %381 = vmatpush3.msra.mxu1 %v138_v10  ;;  %410 = vmatpush3.msra.mxu0 %v233_v23 }
  0x2b   :  { %382 = vmatprep.subr.mxu1 %v496_v0  ;;  %411 = vmatprep.subr.mxu0 %v496_v0 }
  0x2c   :  { %383 = vmatpush3.msra.mxu1 %v137_v11  ;;  %412 = vmatpush3.msra.mxu0 %v232_v24 }
  0x2d   :  { %384 = vmatprep.subr.mxu1 %v496_v0  ;;  %413 = vmatprep.subr.mxu0 %v496_v0 }
  0x2e   :  { %385 = vmatpush3.msra.mxu1 %v136_v12  ;;  %414 = vmatpush3.msra.mxu0 %v231_v25 }
  0x2f   :  { %386 = vmatprep.subr.mxu1 %v496_v0  ;;  %415 = vmatprep.subr.mxu0 %v496_v0 }
  0x30   :  { %387 = vmatpush3.msra.mxu1 %v135_v13  ;;  %416 = vmatpush3.msra.mxu0 %v230_v26 }
  0x31   :  { %388 = vmatprep.subr.mxu1 %v496_v0  ;;  %417 = vmatprep.subr.mxu0 %v496_v0 }
  0x32   :  { %389 = vmatpush3.msra.mxu1 %v134_v14  ;;  %418 = vmatpush3.msra.mxu0 %v229_v32 }
  0x33   :  { %390 = vmatprep.subr.mxu1 %v496_v0  ;;  %419 = vmatprep.subr.mxu0 %v496_v0 }
  0x34   :  { %391 = vmatpush3.msra.mxu1 %v133_v15  ;;  %420 = vmatpush3.msra.mxu0 %v228_v33 }
  0x35   :  { %392 = vmatprep.subr.mxu1 %v496_v0  ;;  %421 = vmatprep.subr.mxu0 %v496_v0 }
  0x36   :  { %393 = vmatpush3.msra.mxu1 %v132_v16  ;;  %422 = vmatpush3.msra.mxu0 %v227_v34 }
  0x37   :  { %394 = vmatprep.subr.mxu1 %v496_v0  ;;  %423 = vmatprep.subr.mxu0 %v496_v0 }
  0x38   :  { %395 = vmatpush3.msra.mxu1 %v131_v17  ;;  %424 = vmatpush3.msra.mxu0 %v226_v35 }
  0x39   :  { %396 = vmatprep.subr.mxu1 %v496_v0  ;;  %425 = vmatprep.subr.mxu0 %v496_v0 }
  0x3a   :  { %397 = vmatpush3.msra.mxu1 %v130_v18  ;;  %426 = vmatpush3.msra.mxu0 %v225_v36 }
  0x3b   :  { %398 = vmatprep.subr.mxu1 %v496_v0  ;;  %427 = vmatprep.subr.mxu0 %v496_v0 }
  0x3c   :  { %399 = vmatpush3.msra.mxu1 %v129_v19  ;;  %428 = vmatpush3.msra.mxu0 %v224_v37 }
  0x3d   :  { %429 = vmatprep.subr.mxu0 %v496_v0 }
  0x3e   :  { %430 = vmatpush3.msra.mxu0 %v223_v38 }
  0x3f   :  { %431 = vmatprep.subr.mxu0 %v496_v0 }
  0x40   :  { %432 = vmatpush3.msra.mxu0 %v222_v39 }
  0x41   :  { %433 = vmatprep.subr.mxu0 %v496_v0 }
  0x42   :  { %434 = vmatpush3.msra.mxu0 %v221_v40 }
  0xe1   :  { %v124_v28 = vpop.f32.mrf.mxu0 }
  0xe2   :  { %v125_v29 = vadd.f32 %v320_v27, %v124_v28 }
  0xe3   :  { %v367_v30 = vpop.f32.mrf.mxu0 }
  0xe4   :  { %444 = vtanh.f32 %v125_v29 }
  0xf1   :  { %v445_v31 = vpop.eup %444 }
  0xf2   :  { %401 = vmatmul.mubr.f32.vlgmr.msra.gmra.mxu1 %v445_v31 }
 0x1b2   :  { %v216_v42 = vpop.f32.mrf.mxu1 }
 0x1b3   :  { %v217_v43 = vadd.f32 %v322_v41, %v216_v42 }
 0x1b4   :  { %v402_v44 = vpop.f32.mrf.mxu1 }
 0x1b5   :  { %446 = vtanh.f32 %v217_v43 }
 0x1c2   :  { %v447_v45 = vpop.eup %446 }
 0x1c3   :  { %436 = vmatmul.mubr.f32.vlgmr.msra.gmra.mxu0 %v447_v45 }
 0x283   :  { %v308_v47 = vpop.f32.mrf.mxu0 }
 0x284   :  { %v309_v48 = vadd.f32 %v323_v46, %v308_v47 }
 0x285   :  { %v437_v49 = vpop.f32.mrf.mxu0 }
 0x286   :  { %313 = vst.msk [vmem:[%s681_s5] sm:$0xff] %vm312_vm2, %v309_v48 }
 0x287   :  { %318 = vsyncpa [#allocation3], 1 }
 0x288   :  { %319 = vsyncpa [#allocation5], 1 }

</bundles_post_ra>
